<compile_context>
chip_gen: v7x
topology: tpu7x:2x2x1
jax: 0.10.0
libtpu: 0.0.40
codegen_flags: <defaults>
</compile_context>

<pallas_src>
import jax
import jax.numpy as jnp
from jax.experimental import pallas as pl
from jax.experimental.pallas import tpu as pltpu

NEGATIVE_SLOPE = 0.01  # matches nn.LeakyReLU default negative_slope=0.01

_BYPASS_BYTES = 512 * 1024  # below this, fused XLA elementwise wins
_MIN_BLOCKS = 4             # keep the grid shardable / pipelined


def _leaky_relu_kernel(x_ref, o_ref, *, negative_slope):
    x = x_ref[...]
    # f32 multiply for the negative branch (free: HBM-bound), cast back.
    neg = (x.astype(jnp.float32) * jnp.float32(negative_slope)).astype(x.dtype)
    o_ref[...] = jnp.where(x > 0, x, neg)


def _tile_budget():
    """Generation-aware (tile_bytes_per_input, vmem_limit_bytes)."""
    try:
        vmem_cap = pltpu.get_tpu_info().vmem_capacity_bytes
    except Exception:
        vmem_cap = 128 * 1024 * 1024
    if vmem_cap <= 64 * 1024 * 1024:
        # v7x-class: small VMEM but very high HBM BW -> bigger tiles to
        # amortize per-step overhead. 8 MiB * 2 arrays * 2 buffers = 32 MiB.
        return 8 * 1024 * 1024, 48 * 1024 * 1024
    # v5e / v6e: 4 MiB * 2 * 2 = 16 MiB; raise scoped limit explicitly so
    # v5e's 16 MiB default is not the binding constraint.
    return 4 * 1024 * 1024, 32 * 1024 * 1024


def leaky_relu(x: jax.Array, negative_slope: float = NEGATIVE_SLOPE) -> jax.Array:
    """Elementwise LeakyReLU: where(x > 0, x, negative_slope * x). Any rank."""
    orig_shape = x.shape
    total = x.size
    if total == 0:
        return x

    dtype_bytes = jnp.dtype(x.dtype).itemsize

    # --- Tiny-input bypass: pallas_call launch overhead dominates here. ---
    if total * dtype_bytes < _BYPASS_BYTES:
        neg = (x.astype(jnp.float32) * jnp.float32(negative_slope)).astype(x.dtype)
        return jnp.where(x > 0, x, neg)

    tile_bytes, vmem_limit = _tile_budget()
    sublane = max(8, 32 // dtype_bytes)  # 8 f32 / 16 bf16 / 32 int8

    kernel = lambda x_ref, o_ref: _leaky_relu_kernel(
        x_ref, o_ref, negative_slope=negative_slope
    )
    compiler_params = pltpu.CompilerParams(
        dimension_semantics=("parallel",),
        vmem_limit_bytes=vmem_limit,
    )

    flat = x.reshape(-1)  # free for contiguous arrays

    # Lane-dense column width that divides the element count exactly (no pad).
    C = next((c for c in (1024, 512, 256, 128) if total % c == 0), None)

    if C is not None:
        # --- Aligned path: (rows, C) slab, unmasked full-width stores. ---
        rows = total // C
        row_tile = min(tile_bytes // (C * dtype_bytes), pl.cdiv(rows, _MIN_BLOCKS))
        row_tile = max(sublane, (row_tile // sublane) * sublane)
        grid = (pl.cdiv(rows, row_tile),)
        out2 = pl.pallas_call(
            kernel,
            out_shape=jax.ShapeDtypeStruct((rows, C), x.dtype),
            grid=grid,
            in_specs=[pl.BlockSpec((row_tile, C), lambda i: (i, 0))],
            out_specs=pl.BlockSpec((row_tile, C), lambda i: (i, 0)),
            compiler_params=compiler_params,
        )(flat.reshape(rows, C))
        return out2.reshape(orig_shape)

    # --- Misaligned path: 1-D flat array, ragged (masked) final block. ---
    # No jnp.pad and no output slice -> no extra full-array HBM passes.
    gran = sublane * 128
    block = min(tile_bytes // dtype_bytes, pl.cdiv(total, _MIN_BLOCKS))
    block = max(gran, (block // gran) * gran)
    grid = (pl.cdiv(total, block),)
    out_flat = pl.pallas_call(
        kernel,
        out_shape=jax.ShapeDtypeStruct((total,), x.dtype),
        grid=grid,
        in_specs=[pl.BlockSpec((block,), lambda i: (i,))],
        out_specs=pl.BlockSpec((block,), lambda i: (i,)),
        compiler_params=compiler_params,
    )(flat)
    return out_flat.reshape(orig_shape)


if __name__ == "__main__":
    key = jax.random.PRNGKey(0)
    k1, k2, k3 = jax.random.split(key, 3)

    # Shape from the reference script (goes through the small-input bypass).
    x_small = jax.random.normal(k1, (3, 100), dtype=jnp.float32)
    # Aligned larger input -> lane-dense 2-D Pallas path (1 MiB).
    x_aligned = jax.random.normal(k2, (512, 512), dtype=jnp.float32)
    # Misaligned larger input -> 1-D ragged-last-block Pallas path (~1.2 MiB).
    x_ragged = jax.random.normal(k3, (300, 1021), dtype=jnp.float32)

    for xt in (x_small, x_aligned, x_ragged):
        out = jax.block_until_ready(leaky_relu(xt))
        ref = jnp.where(xt > 0, xt, NEGATIVE_SLOPE * xt)
        assert out.shape == xt.shape and out.dtype == xt.dtype
        assert jnp.array_equal(out, ref), f"mismatch for shape {xt.shape}"

    print("KERNEL_OK")
</pallas_src>

<mosaic_0001>
module attributes {stable_mosaic.version = 11 : i64} {
  func.func @_lambda_(%arg0: i32, %arg1: memref<64x1024xf32, #tpu.memory_space<vmem>>, %arg2: memref<64x1024xf32, #tpu.memory_space<vmem>>) attributes {dimension_semantics = [#tpu.dimension_semantics<parallel>], iteration_bounds = array<i64: 4>, scalar_prefetch = 0 : i64, scratch_operands = 0 : i64, tpu.core_type = #tpu.core_type<tc>, window_params = [{transform_indices = @transform_0, window_bounds = array<i64: 64, 1024>}, {transform_indices = @transform_1, window_bounds = array<i64: 64, 1024>}]} {
    %c0 = arith.constant 0 : index
    %c0_0 = arith.constant 0 : index
    %0 = vector.load %arg1[%c0, %c0_0] : memref<64x1024xf32, #tpu.memory_space<vmem>>, vector<64x1024xf32>
    %cst = arith.constant 0.00999999977 : f32
    %1 = vector.broadcast %cst : f32 to vector<64x1024xf32>
    %2 = arith.mulf %0, %1 : vector<64x1024xf32>
    %cst_1 = arith.constant 0.000000e+00 : f32
    %3 = vector.broadcast %cst_1 : f32 to vector<64x1024xf32>
    %4 = arith.cmpf ogt, %0, %3 : vector<64x1024xf32>
    %5 = arith.select %4, %0, %2 : vector<64x1024xi1>, vector<64x1024xf32>
    %c0_2 = arith.constant 0 : index
    %c0_3 = arith.constant 0 : index
    %6 = vector.load %arg2[%c0_2, %c0_3] : memref<64x1024xf32, #tpu.memory_space<vmem>>, vector<64x1024xf32>
    tpu.vector_store %arg2[%c0_2, %c0_3], %5 {strides = array<i32>} : memref<64x1024xf32, #tpu.memory_space<vmem>>, vector<64x1024xf32>,
    return
  }
  func.func @transform_0(%arg0: i32) -> (i32, i32) {
    %c0_i32 = arith.constant 0 : i32
    %c0_i32_0 = arith.constant 0 : i32
    return %arg0, %c0_i32 : i32, i32
  }
  func.func @transform_1(%arg0: i32) -> (i32, i32) {
    %c0_i32 = arith.constant 0 : i32
    %c0_i32_0 = arith.constant 0 : i32
    return %arg0, %c0_i32 : i32, i32
  }
}

</mosaic_0001>

<bundles_post_ra>
// kernel: tpu_custom_call.1
= control target key start
LH: loop header
LB: loop body
LE: loop exit
PB: predicated region body
PF: predicated region fallthrough
CT: control target
= control target key end

     0   :  { %6 = vsyncpa [#allocation3], 0  ;;  %s1023_s0 = inlined_call_operand.hbm [shape: f32[256,1024], index: 0, kind: input, shape index: {}]   ;;  %s1024_s1 = inlined_call_operand.hbm [shape: f32[256,1024], index: 1, kind: output, shape index: {}]  }
   0x1   :  { %8 = vsyncpa [#allocation3 + $0x1], 0 }
   0x2   :  { %9 = vsyncpa [#allocation4], 0 }
   0x3   :  { %11 = vsyncpa [#allocation4 + $0x1], 0  ;;  %s730_s6 = smov 0   ;;  %s732_s7 = smov 0  }
   0x4   :  { %s734_s8 = smov 0   ;;  %s736_s9 = smov 0  }
   0x5 LB: > { %s751_s10 = sadd.s32 4294967295, %s712_s9   ;;  %s546_s11 = sadd.s32 4294967294, %s712_s9   ;;  %s712_s9 = sphi %s736_s9, %s1036_s9   ;;  %s708_s8 = sphi %s734_s8, %s1035_s8   ;;  %s704_s7 = sphi %s732_s7, %s1034_s7   ;;  %s700_s6 = sphi %s730_s6, %s1033_s6  }
   0x6   : > { %s755_s12 = sadd.s32 1, %s712_s9   ;;  %s24_s13 = sadd.s32 1, %s708_s8 }
   0x7   : > { %s21_s14 = ssub.s32 %s712_s9, %s755_s12  ;;  %p31_p0 = scmp.ne.s32.totalorder %s708_s8, %s704_s7 }
   0x8   : > { %p22_p1 = scmp.eq.s32.totalorder %s21_s14, 0  ;;  %p32_p2 = scmp.eq.s32.totalorder %s712_s9, 0 }
   0x9   : > { %p37_p3 = scmp.ne.s32.totalorder %s704_s7, %s700_s6  ;;  %p38_p4 = scmp.eq.s32.totalorder %s751_s10, 0 }
   0xa   : > { %s767_s15 = scalar_select %p22_p1, %s708_s8, %s24_s13  }
   0xb   : > { %p769_p5 = por %p32_p2, %p31_p0  ;;  %p773_p6 = por %p38_p4, %p37_p3 }
   0xc   : > { %p61_p7 = scmp.eq.s32.totalorder %s751_s10, 3  ;;  %p67_p8 = scmp.eq.s32.totalorder %s546_s11, 3 }
   0xd   : > { %p578_p9 = scmp.lt.s32.totalorder %s712_s9, 4  ;;  %s87_s20 = sand.u32 1, %s708_s8  }
   0xe   : > { %p779_p10 = por %p61_p7, %p31_p0  ;;  %p783_p11 = por %p67_p8, %p37_p3 }
   0xf   : > { %s563_s21 = sshll.u32 %s712_s9, 13  ;;  %s549_s22 = sshll.u32 %s87_s20, 9 }
  0x10   : > { %s1028_s18 = scalar_select %p779_p10, 1, 0 }
  0x11   : > { %s1029_s19 = scalar_select %p783_p11, 1, 0 }
  0x12   : > { %s792_s25 = scalar_lea.hbm %s1023_s0, %s563_s21  ;;  %s91_s26 = scalar_lea.vmem [#allocation2], %s549_s22 }
  0x13   : > { %s99_s27 = sshll.u32 %s91_s26, 4  ;;  %p796_p12 = pnand %p578_p9, %p769_p5  ;;  %s800_s27 = int_to_ptr.vmem [resolvable:$true] %s99_s27 }
  0x14   : > { %s802_s29 = scalar_lea.sflag [#allocation3], %s87_s20  ;;  %s616_s30 = scalar_lea.hbm %s792_s25, 8192 }
  0x15   : > { %p617_p13 = scmp.ne.s32.totalorder %s792_s25, %s616_s30  ;;  %p618_p0 = pneg %p796_p12 }
  0x16   : > { %s621_s4 = scalar_lea.hbm %s1023_s0, 32768  ;;  %p622_p3 = scmp.lt.u32.totalorder %s792_s25, %s1023_s0 }
  0x17   : > { %p619_p1 = pnand %p618_p0, %p617_p13  ;;  %p623_p4 = scmp.lt.u32.totalorder %s621_s4, %s616_s30 }
  0x18   : > { %p625_p7 = scmp.lt.u32.totalorder %s616_s30, %s792_s25 }
  0x19   : > { %p620_p2 = pneg %p619_p1  ;;  %p624_p5 = por %p623_p4, %p622_p3 }
  0x1b   : > { %p626_p8 = por %p625_p7, %p624_p5 }
  0x1d   : > { %p627_p9 = pnand %p626_p8, %p620_p2 }
  0x1f   : > { %630 = shalt.err (!%p627_p9)
}
  0x20   : > { %s631_s13 = scalar_lea.vmem %s800_s27, 8192  ;;  %s714_s14 = smov [#allocation2]  }
  0x21   : > { %p632_p13 = scmp.ne.s32.totalorder %s800_s27, %s631_s13  ;;  %s636_s16 = sshll.u32 %s714_s14, 4  ;;  %s637_s16 = int_to_ptr.vmem [resolvable:$false] %s636_s16 }
  0x22   : > { %s638_s20 = scalar_lea.vmem %s637_s16, 16384  ;;  %p639_p10 = scmp.lt.s32.totalorder %s800_s27, %s637_s16 }
  0x23   : > { %p634_p1 = pnand %p632_p13, %p618_p0  ;;  %p640_p3 = scmp.lt.s32.totalorder %s638_s20, %s631_s13 }
  0x25   : > { %p635_p11 = pneg %p634_p1  ;;  %p641_p4 = por %p640_p3, %p639_p10 }
  0x27   : > { %p642_p5 = pnand %p641_p4, %p635_p11 }
  0x29   : > { %645 = shalt.err (!%p642_p5)
}
  0x2a   : > { %s715_s21 = smov 1024   ;;  %s716_s22 = smov 64  }
  0x2b   : > { %573 = dma.hbm_to_vmem [thread:$0]  (!%p796_p12), %s792_s25, 8192, %s800_s27, %s802_s29, %s715_s21, %s715_s21, %s716_s22  }
  0x2c   : > { %p553_p0 = scmp.ge.s32.totalorder %s712_s9, 1  ;;  %p107_p2 = scmp.lt.s32.totalorder %s712_s9, 5 }
  0x2e   : > { %p108_p7 = pnand %p553_p0, %p107_p2 }
  0x2f   : > { %s833_s23 = sand.u32 (!%p108_p7), 1, %s704_s7  }
  0x30   : > { %111 = sbr.rel (%p108_p7) target bundleno = 134 (0x86), region = 24  ;;  %s554_s24 = sshll.u32 (!%p108_p7), %s833_s23, 9 }
  0x31   : > { %s114_s26 = scalar_lea.sflag (!%p108_p7), [#allocation3], %s833_s23  ;;  %s837_s30 = scalar_lea.vmem (!%p108_p7), [#allocation2], %s554_s24 }
  0x37   : > { %691 = dma.done.wait (%p773_p6), %s114_s26, 8192  }
  0x38   : > { %693 = vsyncadd (%p773_p6), %s114_s26, 4294959104  ;;  %v138_v0 = vld [vmem:[%s837_s30] sm:$0xff]  ;;  %v139_v1 = vld [vmem:[%s837_s30 + $0x8] sm:$0xff]  ;;  %s852_s17 = scalar_lea.vmem [#allocation5], %s554_s24  ;;  %s565_s25 = sshll.u32 %s751_s10, 13 }
  0x39   : > { %v140_v2 = vld [vmem:[%s837_s30 + $0x10] sm:$0xff]  ;;  %v202_v3 = vmul.f32 0.01, %v138_v0  ;;  %vm266_vm0 = vcmp.gt.f32.partialorder %v138_v0, 0.0  ;;  %v203_v4 = vmul.f32 0.01, %v139_v1  ;;  %s974_s29 = scalar_lea.hbm %s1024_s1, %s565_s25 }
  0x3a   : > { %vm267_vm1 = vcmp.gt.f32.partialorder %v139_v1, 0.0  ;;  %v204_v5 = vmul.f32 0.01, %v140_v2  ;;  %vm268_vm2 = vcmp.gt.f32.partialorder %v140_v2, 0.0  ;;  %v141_v6 = vld [vmem:[%s837_s30 + $0x18] sm:$0xff]  ;;  %v142_v7 = vld [vmem:[%s837_s30 + $0x20] sm:$0xff] }
  0x3b   : > { %v143_v8 = vld [vmem:[%s837_s30 + $0x28] sm:$0xff]  ;;  %v330_v9 = vsel %vm266_vm0, %v138_v0, %v202_v3  ;;  %v331_v10 = vsel %vm267_vm1, %v139_v1, %v203_v4  ;;  %v205_v11 = vmul.f32 0.01, %v141_v6  ;;  %vm269_vm3 = vcmp.gt.f32.partialorder %v141_v6, 0.0  ;;  %v144_v12 = vld [vmem:[%s837_s30 + $0x30] sm:$0xff]  ;;  %v145_v13 = vld [vmem:[%s837_s30 + $0x38] sm:$0xff] }
  0x3c   : > { %v146_v14 = vld [vmem:[%s837_s30 + $0x40] sm:$0xff]  ;;  %394 = vst [vmem:[%s852_s17] sm:$0xff] %v330_v9  ;;  %395 = vst [vmem:[%s852_s17 + $0x8] sm:$0xff] %v331_v10  ;;  %v332_v15 = vsel %vm268_vm2, %v140_v2, %v204_v5  ;;  %v206_v16 = vmul.f32 0.01, %v142_v7  ;;  %vm270_vm4 = vcmp.gt.f32.partialorder %v142_v7, 0.0  ;;  %v147_v18 = vld [vmem:[%s837_s30 + $0x48] sm:$0xff] }
  0x3d   : > { %v207_v17 = vmul.f32 0.01, %v143_v8  ;;  %396 = vst [vmem:[%s852_s17 + $0x10] sm:$0xff] %v332_v15  ;;  %v333_v19 = vsel %vm269_vm3, %v141_v6, %v205_v11  ;;  %vm271_vm5 = vcmp.gt.f32.partialorder %v143_v8, 0.0  ;;  %v208_v20 = vmul.f32 0.01, %v144_v12 }
  0x3e   : > { %vm272_vm6 = vcmp.gt.f32.partialorder %v144_v12, 0.0  ;;  %v148_v21 = vld [vmem:[%s837_s30 + $0x50] sm:$0xff]  ;;  %397 = vst [vmem:[%s852_s17 + $0x18] sm:$0xff] %v333_v19  ;;  %v334_v22 = vsel %vm270_vm4, %v142_v7, %v206_v16  ;;  %v209_v24 = vmul.f32 0.01, %v145_v13  ;;  %vm273_vm7 = vcmp.gt.f32.partialorder %v145_v13, 0.0 }
  0x3f   : > { %v335_v23 = vsel %vm271_vm5, %v143_v8, %v207_v17  ;;  %v149_v25 = vld [vmem:[%s837_s30 + $0x58] sm:$0xff]  ;;  %v150_v26 = vld [vmem:[%s837_s30 + $0x60] sm:$0xff]  ;;  %398 = vst [vmem:[%s852_s17 + $0x20] sm:$0xff] %v334_v22  ;;  %v336_v27 = vsel %vm272_vm6, %v144_v12, %v208_v20  ;;  %v210_v28 = vmul.f32 0.01, %v146_v14  ;;  %vm274_vm8 = vcmp.gt.f32.partialorder %v146_v14, 0.0 }
  0x40   : > { %399 = vst [vmem:[%s852_s17 + $0x28] sm:$0xff] %v335_v23  ;;  %v211_v29 = vmul.f32 0.01, %v147_v18  ;;  %v151_v30 = vld [vmem:[%s837_s30 + $0x68] sm:$0xff]  ;;  %400 = vst [vmem:[%s852_s17 + $0x30] sm:$0xff] %v336_v27  ;;  %v337_v31 = vsel %vm273_vm7, %v145_v13, %v209_v24  ;;  %vm275_vm9 = vcmp.gt.f32.partialorder %v147_v18, 0.0 }
  0x41   : > { %v212_v32 = vmul.f32 0.01, %v148_v21  ;;  %vm276_vm10 = vcmp.gt.f32.partialorder %v148_v21, 0.0  ;;  %v152_v33 = vld [vmem:[%s837_s30 + $0x70] sm:$0xff]  ;;  %401 = vst [vmem:[%s852_s17 + $0x38] sm:$0xff] %v337_v31  ;;  %v338_v34 = vsel %vm274_vm8, %v146_v14, %v210_v28  ;;  %vm277_vm11 = vcmp.gt.f32.partialorder %v149_v25, 0.0 }
  0x42   : > { %v339_v35 = vsel %vm275_vm9, %v147_v18, %v211_v29  ;;  %v213_v36 = vmul.f32 0.01, %v149_v25  ;;  %v153_v37 = vld [vmem:[%s837_s30 + $0x78] sm:$0xff]  ;;  %v154_v38 = vld [vmem:[%s837_s30 + $0x80] sm:$0xff]  ;;  %402 = vst [vmem:[%s852_s17 + $0x40] sm:$0xff] %v338_v34  ;;  %vm278_vm12 = vcmp.gt.f32.partialorder %v150_v26, 0.0 }
  0x43   : > { %403 = vst [vmem:[%s852_s17 + $0x48] sm:$0xff] %v339_v35  ;;  %v340_v39 = vsel %vm276_vm10, %v148_v21, %v212_v32  ;;  %v214_v40 = vmul.f32 0.01, %v150_v26  ;;  %v215_v41 = vmul.f32 0.01, %v151_v30  ;;  %v155_v42 = vld [vmem:[%s837_s30 + $0x88] sm:$0xff] }
  0x44   : > { %404 = vst [vmem:[%s852_s17 + $0x50] sm:$0xff] %v340_v39  ;;  %v341_v43 = vsel %vm277_vm11, %v149_v25, %v213_v36  ;;  %vm279_vm13 = vcmp.gt.f32.partialorder %v151_v30, 0.0  ;;  %v216_v44 = vmul.f32 0.01, %v152_v33  ;;  %vm280_vm14 = vcmp.gt.f32.partialorder %v152_v33, 0.0  ;;  %v156_v45 = vld [vmem:[%s837_s30 + $0x90] sm:$0xff] }
  0x45   : > { %405 = vst [vmem:[%s852_s17 + $0x58] sm:$0xff] %v341_v43  ;;  %v342_v46 = vsel %vm278_vm12, %v150_v26, %v214_v40  ;;  %v343_v47 = vsel %vm279_vm13, %v151_v30, %v215_v41  ;;  %v217_v48 = vmul.f32 0.01, %v153_v37  ;;  %vm281_vm15 = vcmp.gt.f32.partialorder %v153_v37, 0.0  ;;  %v157_v49 = vld [vmem:[%s837_s30 + $0x98] sm:$0xff]  ;;  %v158_v50 = vld [vmem:[%s837_s30 + $0xa0] sm:$0xff] }
  0x46   : > { %406 = vst [vmem:[%s852_s17 + $0x60] sm:$0xff] %v342_v46  ;;  %407 = vst [vmem:[%s852_s17 + $0x68] sm:$0xff] %v343_v47  ;;  %v344_v51 = vsel %vm280_vm14, %v152_v33, %v216_v44  ;;  %v218_v52 = vmul.f32 0.01, %v154_v38  ;;  %vm282_vm0 = vcmp.gt.f32.partialorder %v154_v38, 0.0  ;;  %v159_v54 = vld [vmem:[%s837_s30 + $0xa8] sm:$0xff] }
  0x47   : > { %v219_v53 = vmul.f32 0.01, %v155_v42  ;;  %408 = vst [vmem:[%s852_s17 + $0x70] sm:$0xff] %v344_v51  ;;  %v345_v55 = vsel %vm281_vm15, %v153_v37, %v217_v48  ;;  %vm283_vm1 = vcmp.gt.f32.partialorder %v155_v42, 0.0  ;;  %v220_v56 = vmul.f32 0.01, %v156_v45 }
  0x48   : > { %vm284_vm2 = vcmp.gt.f32.partialorder %v156_v45, 0.0  ;;  %v160_v57 = vld [vmem:[%s837_s30 + $0xb0] sm:$0xff]  ;;  %409 = vst [vmem:[%s852_s17 + $0x78] sm:$0xff] %v345_v55  ;;  %v346_v58 = vsel %vm282_vm0, %v154_v38, %v218_v52  ;;  %v221_v60 = vmul.f32 0.01, %v157_v49  ;;  %vm285_vm3 = vcmp.gt.f32.partialorder %v157_v49, 0.0 }
  0x49   : > { %v347_v59 = vsel %vm283_vm1, %v155_v42, %v219_v53  ;;  %v161_v61 = vld [vmem:[%s837_s30 + $0xb8] sm:$0xff]  ;;  %v162_v62 = vld [vmem:[%s837_s30 + $0xc0] sm:$0xff]  ;;  %410 = vst [vmem:[%s852_s17 + $0x80] sm:$0xff] %v346_v58  ;;  %v348_v63 = vsel %vm284_vm2, %v156_v45, %v220_v56  ;;  %v222_v0 = vmul.f32 0.01, %v158_v50  ;;  %vm286_vm4 = vcmp.gt.f32.partialorder %v158_v50, 0.0 }
  0x4a   : > { %411 = vst [vmem:[%s852_s17 + $0x88] sm:$0xff] %v347_v59  ;;  %v223_v1 = vmul.f32 0.01, %v159_v54  ;;  %v163_v2 = vld [vmem:[%s837_s30 + $0xc8] sm:$0xff]  ;;  %412 = vst [vmem:[%s852_s17 + $0x90] sm:$0xff] %v348_v63  ;;  %v349_v3 = vsel %vm285_vm3, %v157_v49, %v221_v60  ;;  %vm287_vm5 = vcmp.gt.f32.partialorder %v159_v54, 0.0 }
  0x4b   : > { %v224_v4 = vmul.f32 0.01, %v160_v57  ;;  %vm288_vm6 = vcmp.gt.f32.partialorder %v160_v57, 0.0  ;;  %v164_v5 = vld [vmem:[%s837_s30 + $0xd0] sm:$0xff]  ;;  %413 = vst [vmem:[%s852_s17 + $0x98] sm:$0xff] %v349_v3  ;;  %v350_v6 = vsel %vm286_vm4, %v158_v50, %v222_v0  ;;  %vm289_vm7 = vcmp.gt.f32.partialorder %v161_v61, 0.0 }
  0x4c   : > { %v351_v7 = vsel %vm287_vm5, %v159_v54, %v223_v1  ;;  %v225_v8 = vmul.f32 0.01, %v161_v61  ;;  %v165_v9 = vld [vmem:[%s837_s30 + $0xd8] sm:$0xff]  ;;  %v166_v10 = vld [vmem:[%s837_s30 + $0xe0] sm:$0xff]  ;;  %414 = vst [vmem:[%s852_s17 + $0xa0] sm:$0xff] %v350_v6  ;;  %vm290_vm8 = vcmp.gt.f32.partialorder %v162_v62, 0.0 }
  0x4d   : > { %415 = vst [vmem:[%s852_s17 + $0xa8] sm:$0xff] %v351_v7  ;;  %v352_v11 = vsel %vm288_vm6, %v160_v57, %v224_v4  ;;  %v226_v12 = vmul.f32 0.01, %v162_v62  ;;  %v227_v13 = vmul.f32 0.01, %v163_v2  ;;  %v167_v14 = vld [vmem:[%s837_s30 + $0xe8] sm:$0xff] }
  0x4e   : > { %416 = vst [vmem:[%s852_s17 + $0xb0] sm:$0xff] %v352_v11  ;;  %v353_v15 = vsel %vm289_vm7, %v161_v61, %v225_v8  ;;  %vm291_vm9 = vcmp.gt.f32.partialorder %v163_v2, 0.0  ;;  %v228_v16 = vmul.f32 0.01, %v164_v5  ;;  %vm292_vm10 = vcmp.gt.f32.partialorder %v164_v5, 0.0  ;;  %v168_v17 = vld [vmem:[%s837_s30 + $0xf0] sm:$0xff] }
  0x4f   : > { %417 = vst [vmem:[%s852_s17 + $0xb8] sm:$0xff] %v353_v15  ;;  %v354_v18 = vsel %vm290_vm8, %v162_v62, %v226_v12  ;;  %v355_v19 = vsel %vm291_vm9, %v163_v2, %v227_v13  ;;  %v229_v20 = vmul.f32 0.01, %v165_v9  ;;  %vm293_vm11 = vcmp.gt.f32.partialorder %v165_v9, 0.0  ;;  %v169_v21 = vld [vmem:[%s837_s30 + $0xf8] sm:$0xff]  ;;  %v170_v22 = vld [vmem:[%s837_s30 + $0x100] sm:$0xff] }
  0x50   : > { %418 = vst [vmem:[%s852_s17 + $0xc0] sm:$0xff] %v354_v18  ;;  %419 = vst [vmem:[%s852_s17 + $0xc8] sm:$0xff] %v355_v19  ;;  %v356_v23 = vsel %vm292_vm10, %v164_v5, %v228_v16  ;;  %v230_v24 = vmul.f32 0.01, %v166_v10  ;;  %vm294_vm12 = vcmp.gt.f32.partialorder %v166_v10, 0.0  ;;  %v171_v26 = vld [vmem:[%s837_s30 + $0x108] sm:$0xff] }
  0x51   : > { %v231_v25 = vmul.f32 0.01, %v167_v14  ;;  %420 = vst [vmem:[%s852_s17 + $0xd0] sm:$0xff] %v356_v23  ;;  %v357_v27 = vsel %vm293_vm11, %v165_v9, %v229_v20  ;;  %vm295_vm13 = vcmp.gt.f32.partialorder %v167_v14, 0.0  ;;  %v232_v28 = vmul.f32 0.01, %v168_v17 }
  0x52   : > { %vm296_vm14 = vcmp.gt.f32.partialorder %v168_v17, 0.0  ;;  %v172_v29 = vld [vmem:[%s837_s30 + $0x110] sm:$0xff]  ;;  %421 = vst [vmem:[%s852_s17 + $0xd8] sm:$0xff] %v357_v27  ;;  %v358_v30 = vsel %vm294_vm12, %v166_v10, %v230_v24  ;;  %v233_v32 = vmul.f32 0.01, %v169_v21  ;;  %vm297_vm15 = vcmp.gt.f32.partialorder %v169_v21, 0.0 }
  0x53   : > { %v359_v31 = vsel %vm295_vm13, %v167_v14, %v231_v25  ;;  %v173_v33 = vld [vmem:[%s837_s30 + $0x118] sm:$0xff]  ;;  %v174_v34 = vld [vmem:[%s837_s30 + $0x120] sm:$0xff]  ;;  %422 = vst [vmem:[%s852_s17 + $0xe0] sm:$0xff] %v358_v30  ;;  %v360_v35 = vsel %vm296_vm14, %v168_v17, %v232_v28  ;;  %v234_v36 = vmul.f32 0.01, %v170_v22  ;;  %vm298_vm0 = vcmp.gt.f32.partialorder %v170_v22, 0.0 }
  0x54   : > { %423 = vst [vmem:[%s852_s17 + $0xe8] sm:$0xff] %v359_v31  ;;  %v235_v37 = vmul.f32 0.01, %v171_v26  ;;  %v175_v38 = vld [vmem:[%s837_s30 + $0x128] sm:$0xff]  ;;  %424 = vst [vmem:[%s852_s17 + $0xf0] sm:$0xff] %v360_v35  ;;  %v361_v39 = vsel %vm297_vm15, %v169_v21, %v233_v32  ;;  %vm299_vm1 = vcmp.gt.f32.partialorder %v171_v26, 0.0 }
  0x55   : > { %v236_v40 = vmul.f32 0.01, %v172_v29  ;;  %vm300_vm2 = vcmp.gt.f32.partialorder %v172_v29, 0.0  ;;  %v176_v41 = vld [vmem:[%s837_s30 + $0x130] sm:$0xff]  ;;  %425 = vst [vmem:[%s852_s17 + $0xf8] sm:$0xff] %v361_v39  ;;  %v362_v42 = vsel %vm298_vm0, %v170_v22, %v234_v36  ;;  %vm301_vm3 = vcmp.gt.f32.partialorder %v173_v33, 0.0 }
  0x56   : > { %v363_v43 = vsel %vm299_vm1, %v171_v26, %v235_v37  ;;  %v237_v44 = vmul.f32 0.01, %v173_v33  ;;  %v177_v45 = vld [vmem:[%s837_s30 + $0x138] sm:$0xff]  ;;  %v178_v46 = vld [vmem:[%s837_s30 + $0x140] sm:$0xff]  ;;  %426 = vst [vmem:[%s852_s17 + $0x100] sm:$0xff] %v362_v42  ;;  %vm302_vm4 = vcmp.gt.f32.partialorder %v174_v34, 0.0 }
  0x57   : > { %427 = vst [vmem:[%s852_s17 + $0x108] sm:$0xff] %v363_v43  ;;  %v364_v47 = vsel %vm300_vm2, %v172_v29, %v236_v40  ;;  %v238_v48 = vmul.f32 0.01, %v174_v34  ;;  %v239_v49 = vmul.f32 0.01, %v175_v38  ;;  %v179_v50 = vld [vmem:[%s837_s30 + $0x148] sm:$0xff] }
  0x58   : > { %428 = vst [vmem:[%s852_s17 + $0x110] sm:$0xff] %v364_v47  ;;  %v365_v51 = vsel %vm301_vm3, %v173_v33, %v237_v44  ;;  %vm303_vm5 = vcmp.gt.f32.partialorder %v175_v38, 0.0  ;;  %v240_v52 = vmul.f32 0.01, %v176_v41  ;;  %vm304_vm6 = vcmp.gt.f32.partialorder %v176_v41, 0.0  ;;  %v180_v53 = vld [vmem:[%s837_s30 + $0x150] sm:$0xff] }
  0x59   : > { %429 = vst [vmem:[%s852_s17 + $0x118] sm:$0xff] %v365_v51  ;;  %v366_v54 = vsel %vm302_vm4, %v174_v34, %v238_v48  ;;  %v367_v55 = vsel %vm303_vm5, %v175_v38, %v239_v49  ;;  %v241_v56 = vmul.f32 0.01, %v177_v45  ;;  %vm305_vm7 = vcmp.gt.f32.partialorder %v177_v45, 0.0  ;;  %v181_v57 = vld [vmem:[%s837_s30 + $0x158] sm:$0xff]  ;;  %v182_v58 = vld [vmem:[%s837_s30 + $0x160] sm:$0xff] }
  0x5a   : > { %430 = vst [vmem:[%s852_s17 + $0x120] sm:$0xff] %v366_v54  ;;  %431 = vst [vmem:[%s852_s17 + $0x128] sm:$0xff] %v367_v55  ;;  %v368_v59 = vsel %vm304_vm6, %v176_v41, %v240_v52  ;;  %v242_v60 = vmul.f32 0.01, %v178_v46  ;;  %vm306_vm8 = vcmp.gt.f32.partialorder %v178_v46, 0.0  ;;  %v183_v62 = vld [vmem:[%s837_s30 + $0x168] sm:$0xff] }
  0x5b   : > { %v243_v61 = vmul.f32 0.01, %v179_v50  ;;  %432 = vst [vmem:[%s852_s17 + $0x130] sm:$0xff] %v368_v59  ;;  %v369_v63 = vsel %vm305_vm7, %v177_v45, %v241_v56  ;;  %vm307_vm9 = vcmp.gt.f32.partialorder %v179_v50, 0.0  ;;  %v244_v0 = vmul.f32 0.01, %v180_v53 }
  0x5c   : > { %vm308_vm10 = vcmp.gt.f32.partialorder %v180_v53, 0.0  ;;  %v184_v1 = vld [vmem:[%s837_s30 + $0x170] sm:$0xff]  ;;  %433 = vst [vmem:[%s852_s17 + $0x138] sm:$0xff] %v369_v63  ;;  %v370_v2 = vsel %vm306_vm8, %v178_v46, %v242_v60  ;;  %v245_v4 = vmul.f32 0.01, %v181_v57  ;;  %vm309_vm11 = vcmp.gt.f32.partialorder %v181_v57, 0.0 }
  0x5d   : > { %v371_v3 = vsel %vm307_vm9, %v179_v50, %v243_v61  ;;  %v185_v5 = vld [vmem:[%s837_s30 + $0x178] sm:$0xff]  ;;  %v186_v6 = vld [vmem:[%s837_s30 + $0x180] sm:$0xff]  ;;  %434 = vst [vmem:[%s852_s17 + $0x140] sm:$0xff] %v370_v2  ;;  %v372_v7 = vsel %vm308_vm10, %v180_v53, %v244_v0  ;;  %v246_v8 = vmul.f32 0.01, %v182_v58  ;;  %vm310_vm12 = vcmp.gt.f32.partialorder %v182_v58, 0.0 }
  0x5e   : > { %435 = vst [vmem:[%s852_s17 + $0x148] sm:$0xff] %v371_v3  ;;  %v247_v9 = vmul.f32 0.01, %v183_v62  ;;  %v187_v10 = vld [vmem:[%s837_s30 + $0x188] sm:$0xff]  ;;  %436 = vst [vmem:[%s852_s17 + $0x150] sm:$0xff] %v372_v7  ;;  %v373_v11 = vsel %vm309_vm11, %v181_v57, %v245_v4  ;;  %vm311_vm13 = vcmp.gt.f32.partialorder %v183_v62, 0.0 }
  0x5f   : > { %v248_v12 = vmul.f32 0.01, %v184_v1  ;;  %vm312_vm14 = vcmp.gt.f32.partialorder %v184_v1, 0.0  ;;  %v188_v13 = vld [vmem:[%s837_s30 + $0x190] sm:$0xff]  ;;  %437 = vst [vmem:[%s852_s17 + $0x158] sm:$0xff] %v373_v11  ;;  %v374_v14 = vsel %vm310_vm12, %v182_v58, %v246_v8  ;;  %vm313_vm15 = vcmp.gt.f32.partialorder %v185_v5, 0.0 }
  0x60   : > { %v375_v15 = vsel %vm311_vm13, %v183_v62, %v247_v9  ;;  %v249_v16 = vmul.f32 0.01, %v185_v5  ;;  %v189_v17 = vld [vmem:[%s837_s30 + $0x198] sm:$0xff]  ;;  %v190_v18 = vld [vmem:[%s837_s30 + $0x1a0] sm:$0xff]  ;;  %438 = vst [vmem:[%s852_s17 + $0x160] sm:$0xff] %v374_v14  ;;  %vm314_vm0 = vcmp.gt.f32.partialorder %v186_v6, 0.0 }
  0x61   : > { %439 = vst [vmem:[%s852_s17 + $0x168] sm:$0xff] %v375_v15  ;;  %v376_v19 = vsel %vm312_vm14, %v184_v1, %v248_v12  ;;  %v250_v20 = vmul.f32 0.01, %v186_v6  ;;  %v251_v21 = vmul.f32 0.01, %v187_v10  ;;  %v191_v22 = vld [vmem:[%s837_s30 + $0x1a8] sm:$0xff] }
  0x62   : > { %440 = vst [vmem:[%s852_s17 + $0x170] sm:$0xff] %v376_v19  ;;  %v377_v23 = vsel %vm313_vm15, %v185_v5, %v249_v16  ;;  %vm315_vm1 = vcmp.gt.f32.partialorder %v187_v10, 0.0  ;;  %v252_v24 = vmul.f32 0.01, %v188_v13  ;;  %vm316_vm2 = vcmp.gt.f32.partialorder %v188_v13, 0.0  ;;  %v192_v25 = vld [vmem:[%s837_s30 + $0x1b0] sm:$0xff] }
  0x63   : > { %441 = vst [vmem:[%s852_s17 + $0x178] sm:$0xff] %v377_v23  ;;  %v378_v26 = vsel %vm314_vm0, %v186_v6, %v250_v20  ;;  %v379_v27 = vsel %vm315_vm1, %v187_v10, %v251_v21  ;;  %v253_v28 = vmul.f32 0.01, %v189_v17  ;;  %vm317_vm3 = vcmp.gt.f32.partialorder %v189_v17, 0.0  ;;  %v193_v29 = vld [vmem:[%s837_s30 + $0x1b8] sm:$0xff]  ;;  %v194_v30 = vld [vmem:[%s837_s30 + $0x1c0] sm:$0xff] }
  0x64   : > { %442 = vst [vmem:[%s852_s17 + $0x180] sm:$0xff] %v378_v26  ;;  %443 = vst [vmem:[%s852_s17 + $0x188] sm:$0xff] %v379_v27  ;;  %v380_v31 = vsel %vm316_vm2, %v188_v13, %v252_v24  ;;  %v254_v32 = vmul.f32 0.01, %v190_v18  ;;  %vm318_vm4 = vcmp.gt.f32.partialorder %v190_v18, 0.0  ;;  %v195_v34 = vld [vmem:[%s837_s30 + $0x1c8] sm:$0xff] }
  0x65   : > { %v255_v33 = vmul.f32 0.01, %v191_v22  ;;  %444 = vst [vmem:[%s852_s17 + $0x190] sm:$0xff] %v380_v31  ;;  %v381_v35 = vsel %vm317_vm3, %v189_v17, %v253_v28  ;;  %vm319_vm5 = vcmp.gt.f32.partialorder %v191_v22, 0.0  ;;  %v256_v36 = vmul.f32 0.01, %v192_v25 }
  0x66   : > { %vm320_vm6 = vcmp.gt.f32.partialorder %v192_v25, 0.0  ;;  %v196_v37 = vld [vmem:[%s837_s30 + $0x1d0] sm:$0xff]  ;;  %445 = vst [vmem:[%s852_s17 + $0x198] sm:$0xff] %v381_v35  ;;  %v382_v38 = vsel %vm318_vm4, %v190_v18, %v254_v32  ;;  %v257_v40 = vmul.f32 0.01, %v193_v29  ;;  %vm321_vm7 = vcmp.gt.f32.partialorder %v193_v29, 0.0 }
  0x67   : > { %v383_v39 = vsel %vm319_vm5, %v191_v22, %v255_v33  ;;  %v197_v41 = vld [vmem:[%s837_s30 + $0x1d8] sm:$0xff]  ;;  %v198_v42 = vld [vmem:[%s837_s30 + $0x1e0] sm:$0xff]  ;;  %446 = vst [vmem:[%s852_s17 + $0x1a0] sm:$0xff] %v382_v38  ;;  %v384_v43 = vsel %vm320_vm6, %v192_v25, %v256_v36  ;;  %v258_v44 = vmul.f32 0.01, %v194_v30  ;;  %vm322_vm8 = vcmp.gt.f32.partialorder %v194_v30, 0.0 }
  0x68   : > { %447 = vst [vmem:[%s852_s17 + $0x1a8] sm:$0xff] %v383_v39  ;;  %v259_v45 = vmul.f32 0.01, %v195_v34  ;;  %v199_v46 = vld [vmem:[%s837_s30 + $0x1e8] sm:$0xff]  ;;  %448 = vst [vmem:[%s852_s17 + $0x1b0] sm:$0xff] %v384_v43  ;;  %v385_v47 = vsel %vm321_vm7, %v193_v29, %v257_v40  ;;  %vm323_vm9 = vcmp.gt.f32.partialorder %v195_v34, 0.0 }
  0x69   : > { %v260_v48 = vmul.f32 0.01, %v196_v37  ;;  %vm324_vm10 = vcmp.gt.f32.partialorder %v196_v37, 0.0  ;;  %v200_v49 = vld [vmem:[%s837_s30 + $0x1f0] sm:$0xff]  ;;  %449 = vst [vmem:[%s852_s17 + $0x1b8] sm:$0xff] %v385_v47  ;;  %v386_v50 = vsel %vm322_vm8, %v194_v30, %v258_v44  ;;  %vm325_vm11 = vcmp.gt.f32.partialorder %v197_v41, 0.0 }
  0x6a   : > { %v387_v51 = vsel %vm323_vm9, %v195_v34, %v259_v45  ;;  %v261_v52 = vmul.f32 0.01, %v197_v41  ;;  %v201_v53 = vld [vmem:[%s837_s30 + $0x1f8] sm:$0xff]  ;;  %s473_s27 = sshll.u32 %s852_s17, 4  ;;  %450 = vst [vmem:[%s852_s17 + $0x1c0] sm:$0xff] %v386_v50  ;;  %vm326_vm12 = vcmp.gt.f32.partialorder %v198_v42, 0.0  ;;  %s976_s27 = int_to_ptr.vmem [resolvable:$true] %s473_s27 }
  0x6b   : > { %451 = vst [vmem:[%s852_s17 + $0x1c8] sm:$0xff] %v387_v51  ;;  %v388_v54 = vsel %vm324_vm10, %v196_v37, %v260_v48  ;;  %v262_v55 = vmul.f32 0.01, %v198_v42  ;;  %v263_v56 = vmul.f32 0.01, %v199_v46  ;;  %vm327_vm13 = vcmp.gt.f32.partialorder %v199_v46, 0.0 }
  0x6c   : > { %452 = vst [vmem:[%s852_s17 + $0x1d0] sm:$0xff] %v388_v54  ;;  %v389_v57 = vsel %vm325_vm11, %v197_v41, %v261_v52  ;;  %v264_v58 = vmul.f32 0.01, %v200_v49  ;;  %vm328_vm14 = vcmp.gt.f32.partialorder %v200_v49, 0.0  ;;  %v265_v61 = vmul.f32 0.01, %v201_v53 }
  0x6d   : > { %453 = vst [vmem:[%s852_s17 + $0x1d8] sm:$0xff] %v389_v57  ;;  %v390_v59 = vsel %vm326_vm12, %v198_v42, %v262_v55  ;;  %v391_v60 = vsel %vm327_vm13, %v199_v46, %v263_v56  ;;  %vm329_vm15 = vcmp.gt.f32.partialorder %v201_v53, 0.0  ;;  %s459_s2 = scalar_lea.sflag [#allocation4], %s833_s23  ;;  %s646_s3 = scalar_lea.vmem %s976_s27, 8192 }
  0x6e   : > { %454 = vst [vmem:[%s852_s17 + $0x1e0] sm:$0xff] %v390_v59  ;;  %455 = vst [vmem:[%s852_s17 + $0x1e8] sm:$0xff] %v391_v60  ;;  %v392_v62 = vsel %vm328_vm14, %v200_v49, %v264_v58  ;;  %v393_v63 = vsel %vm329_vm15, %v201_v53, %v265_v61  ;;  %p647_p6 = scmp.ne.s32.totalorder %s976_s27, %s646_s3  ;;  %p1031_p10 = scmp.ne.s32.totalorder %s1028_s18, 0 }
  0x6f   : > { %456 = vst [vmem:[%s852_s17 + $0x1f0] sm:$0xff] %v392_v62  ;;  %457 = vst [vmem:[%s852_s17 + $0x1f8] sm:$0xff] %v393_v63  ;;  %s717_s4 = smov [#allocation5]  }
  0x70   : > { %p648_p11 = pnand %p647_p6, %p1031_p10  ;;  %s650_s5 = sshll.u32 %s717_s4, 4  ;;  %s651_s5 = int_to_ptr.vmem [resolvable:$false] %s650_s5 }
  0x71   : > { %s652_s11 = scalar_lea.vmem %s651_s5, 16384  ;;  %p653_p8 = scmp.lt.s32.totalorder %s976_s27, %s651_s5 }
  0x72   : > { %p649_p12 = pneg %p648_p11  ;;  %p654_p9 = scmp.lt.s32.totalorder %s652_s11, %s646_s3 }
  0x74   : > { %p655_p13 = por %p654_p9, %p653_p8 }
  0x76   : > { %p656_p1 = pnand %p655_p13, %p649_p12 }
  0x78   : > { %659 = shalt.err (!%p656_p1)
}
  0x79   : > { %s660_s13 = scalar_lea.hbm %s974_s29, 8192  ;;  %s664_s20 = scalar_lea.hbm %s1024_s1, 32768 }
  0x7a   : > { %p661_p3 = scmp.ne.s32.totalorder %s974_s29, %s660_s13  ;;  %p665_p0 = scmp.lt.u32.totalorder %s974_s29, %s1024_s1 }
  0x7b   : > { %p666_p2 = scmp.lt.u32.totalorder %s664_s20, %s660_s13  ;;  %p668_p6 = scmp.lt.u32.totalorder %s660_s13, %s974_s29 }
  0x7c   : > { %p662_p4 = pnand %p661_p3, %p1031_p10 }
  0x7d   : > { %p667_p7 = por %p666_p2, %p665_p0 }
  0x7e   : > { %p663_p5 = pneg %p662_p4 }
  0x7f   : > { %p669_p11 = por %p668_p6, %p667_p7 }
  0x81   : > { %p670_p12 = pnand %p669_p11, %p663_p5 }
  0x83   : > { %673 = shalt.err (!%p670_p12)
}
  0x84   : > { %s718_s24 = smov 1024   ;;  %s719_s26 = smov 64  }
  0x85   : > { %568 = dma.vmem_to_hbm [thread:$0]  (%p1031_p10), %s976_s27, 8192, %s974_s29, %s459_s2, %s718_s24, %s718_s24, %s719_s26  }
  0x86 PF: > { %p579_p8 = scmp.ge.s32.totalorder %s712_s9, 2  ;;  %s488_s30 = sand.u32 1, %s700_s6  }
  0x87   : > { %p1032_p9 = scmp.ne.s32.totalorder %s1029_s19, 0  ;;  %s489_s17 = scalar_lea.sflag [#allocation4], %s488_s30 }
  0x89   : > { %p575_p13 = pnand %p579_p8, %p1032_p9 }
  0x8b   : > { %695 = dma.done.wait (!%p575_p13), %s489_s17, 8192  }
  0x8c   : > { %697 = vsyncadd (!%p575_p13), %s489_s17, 4294959104  ;;  %p14_p1 = scmp.ge.s32.totalorder %s755_s12, 6   ;;  %s1033_s6 = smov %s704_s7 }
  0x8d   : > { %s1034_s7 = smov %s708_s8  ;;  %s1035_s8 = smov %s767_s15 }
  0x8e   : > { %s1036_s9 = smov %s755_s12  ;;  %16 = sbr.rel (!%p14_p1) target bundleno = 5 (0x5), region = 69 }
  0x95   :  { %494 = vsyncpa [#allocation3], 1 }
  0x96   :  { %496 = vsyncpa [#allocation3 + $0x1], 1 }
  0x97   :  { %497 = vsyncpa [#allocation4], 1 }
  0x98   :  { %499 = vsyncpa [#allocation4 + $0x1], 1 }

</bundles_post_ra>
